<compile_context>
chip_gen: v6e
topology: v6e:2x2x1
jax: 0.10.0
libtpu: 0.0.40
codegen_flags: <defaults>
</compile_context>

<pallas_src>
import functools

import jax
import jax.numpy as jnp
import numpy as np
from jax import lax
from jax.experimental import pallas as pl
from jax.experimental.pallas import tpu as pltpu

EPS = 1e-5


def decoder_block_kernel(x_ref, xh_ref, w1_ref, wdec_ref, w3_ref,
                         t1_ref, t2_ref, t3_ref, o_ref, *, Nb, Ht, W):
    """One (batch-block, H-tile) step of the fused DecoderBlock forward."""
    Cin = x_ref.shape[-1]
    Cmid = w1_ref.shape[-1]
    Fo4 = o_ref.shape[-1]
    M = Nb * Ht * W

    # conv1 (1x1, bn1 scale folded into w1) + shift + relu  -- bf16 MXU, f32 acc
    x = x_ref[...].reshape(M, Cin)
    h = jnp.dot(x, w1_ref[...], preferred_element_type=jnp.float32)
    h = jnp.maximum(h + t1_ref[...], 0.0)                        # (M, Cmid) f32

    # Halo row = first row of the next H tile (same 1x1 conv); supplies the
    # in[m+1, :] shift at this tile's last row.  Zeroed on the last tile.
    xh = xh_ref[...].reshape(Nb * W, Cin)
    hh = jnp.dot(xh, w1_ref[...], preferred_element_type=jnp.float32)
    hh = jnp.maximum(hh + t1_ref[...], 0.0)
    keep_halo = (pl.program_id(1) + 1 < pl.num_programs(1)).astype(jnp.float32)
    hh = hh * keep_halo

    hb = h.astype(jnp.bfloat16).reshape(Nb, Ht, W, Cmid)
    hhb = hh.astype(jnp.bfloat16).reshape(Nb, 1, W, Cmid)

    # Shifted views (built directly in bf16; no padded copy, no lane concat):
    #   hR  = h[m, n+1]   (zero column at n = W-1)
    #   hD  = h[m+1, n]   (halo row at m = Ht-1)
    #   hRD = h[m+1, n+1]
    zcol = jnp.zeros((Nb, Ht, 1, Cmid), jnp.bfloat16)
    hR = jnp.concatenate([hb[:, :, 1:, :], zcol], axis=2) if W > 1 else zcol
    hD = jnp.concatenate([hb[:, 1:, :, :], hhb], axis=1) if Ht > 1 else hhb
    hRD = jnp.concatenate([hD[:, :, 1:, :], zcol], axis=2) if W > 1 else zcol

    # ConvTranspose2d(k=3, s=2, p=1, op=1): 4 accumulating split-K matmuls.
    # wdec_ref[i] is the (Cmid, 4*Cmid) tap row-block for shift i; the four
    # column blocks of y are the (row, col)-parity planes of the upsampled map.
    flat = lambda a: a.reshape(M, Cmid)
    y = jnp.dot(flat(hb), wdec_ref[0], preferred_element_type=jnp.float32)
    y = y + jnp.dot(flat(hR), wdec_ref[1], preferred_element_type=jnp.float32)
    y = y + jnp.dot(flat(hD), wdec_ref[2], preferred_element_type=jnp.float32)
    y = y + jnp.dot(flat(hRD), wdec_ref[3], preferred_element_type=jnp.float32)
    y = jnp.maximum(y + t2_ref[...], 0.0)                        # (M, 4*Cmid)

    # conv3 (1x1, block-diagonal over the 4 parity planes) + shift + relu
    z = jnp.dot(y.astype(jnp.bfloat16), w3_ref[...],
                preferred_element_type=jnp.float32)
    z = jnp.maximum(z + t3_ref[...], 0.0)                        # (M, 4*Fo)

    o_ref[...] = z.astype(jnp.bfloat16).reshape(Nb, Ht, W, Fo4)  # lane-dense bf16


def _largest_divisor_leq(n, cap):
    cap = max(1, min(n, cap))
    for d in range(cap, 0, -1):
        if n % d == 0:
            return d
    return 1


def decoder_block_pallas(x_nchw, kparams, *, h_tile=None, batch_block=None):
    w1, wdec, w3blk, t1, t2, t3 = kparams
    N, Cin, H, W = x_nchw.shape
    Fo4 = w3blk.shape[1]
    Fo = Fo4 // 4

    # NCHW -> NHWC bf16 (one XLA pass; input bytes are small next to output).
    x = jnp.transpose(x_nchw, (0, 2, 3, 1)).astype(jnp.bfloat16)  # (N, H, W, Cin)

    if batch_block is None:
        batch_block = _largest_divisor_leq(N, max(1, 256 // (H * W)))
    Nb = batch_block
    if h_tile is None:
        # ~<= 4096 rows per tile keeps the per-step working set well inside the
        # default scoped VMEM on all generations (incl. v7x's 64 MiB physical).
        h_tile = _largest_divisor_leq(H, max(1, 4096 // W))
    Ht = h_tile
    assert N % Nb == 0 and H % Ht == 0

    grid = (N // Nb, H // Ht)
    full = lambda a: pl.BlockSpec(a.shape, lambda b, i: (0,) * a.ndim)

    planes = pl.pallas_call(
        functools.partial(decoder_block_kernel, Nb=Nb, Ht=Ht, W=W),
        out_shape=jax.ShapeDtypeStruct((N, H, W, Fo4), jnp.bfloat16),
        grid_spec=pltpu.PrefetchScalarGridSpec(
            num_scalar_prefetch=0,
            grid=grid,
            in_specs=[
                # main x tile
                pl.BlockSpec((Nb, Ht, W, Cin), lambda b, i: (b, i, 0, 0)),
                # 1-row halo: first row of the next H tile (clamped; the kernel
                # zeroes it on the last tile).
                pl.BlockSpec((Nb, 1, W, Cin),
                             lambda b, i: (b, jnp.minimum((i + 1) * Ht, H - 1),
                                           0, 0)),
                full(w1), full(wdec), full(w3blk),
                full(t1), full(t2), full(t3),
            ],
            out_specs=pl.BlockSpec((Nb, Ht, W, Fo4), lambda b, i: (b, i, 0, 0)),
        ),
        compiler_params=pltpu.CompilerParams(
            dimension_semantics=("parallel", "parallel")),
    )(x, x, w1, wdec, w3blk, t1, t2, t3)

    # planes[n, m, w, (2r+s)*Fo + f] = out[n, f, 2m+r, 2w+s]
    # Depth-to-space + NCHW in a single fused XLA transpose over bf16 data.
    out = planes.reshape(N, H, W, 2, 2, Fo)
    out = jnp.transpose(out, (0, 5, 1, 3, 2, 4)).reshape(N, Fo, 2 * H, 2 * W)
    return out.astype(jnp.float32)


# ------------------------- parameter construction ---------------------------

def make_raw_params(key, in_channels, n_filters):
    Cmid = in_channels // 4
    ks = jax.random.split(key, 16)
    nrm = lambda k, s, sc=0.1: sc * jax.random.normal(k, s, jnp.float32)

    def bn_params(k, C):
        k1, k2, k3, k4 = jax.random.split(k, 4)
        gamma = 1.0 + nrm(k1, (C,))
        beta = nrm(k2, (C,))
        mean = nrm(k3, (C,))
        var = 1.0 + 0.1 * jnp.abs(jax.random.normal(k4, (C,), jnp.float32))
        return (gamma, beta, mean, var)

    conv1_w = nrm(ks[0], (Cmid, in_channels, 1, 1))          # (Cout, Cin, 1, 1)
    conv1_b = nrm(ks[1], (Cmid,))
    bn1 = bn_params(ks[2], Cmid)
    deconv_w = nrm(ks[3], (Cmid, Cmid, 3, 3))                # (Cin, Cout, kH, kW)
    deconv_b = nrm(ks[4], (Cmid,))
    bn2 = bn_params(ks[5], Cmid)
    conv3_w = nrm(ks[6], (n_filters, Cmid, 1, 1))            # (Cout, Cin, 1, 1)
    conv3_b = nrm(ks[7], (n_filters,))
    bn3 = bn_params(ks[8], n_filters)
    return (conv1_w, conv1_b, bn1, deconv_w, deconv_b, bn2,
            conv3_w, conv3_b, bn3)


def fold_params(raw):
    """Fold conv biases + BN (scale into weights, shift kept) and pack weights."""
    (conv1_w, conv1_b, bn1, deconv_w, deconv_b, bn2, conv3_w, conv3_b, bn3) = raw

    def fold_bn(p, bias):
        g, beta, m, v = p
        s = g / jnp.sqrt(v + EPS)
        t = (bias - m) * s + beta          # conv bias folded into the shift
        return s, t

    Cmid = conv1_w.shape[0]
    Fo = conv3_w.shape[0]

    s1, t1 = fold_bn(bn1, conv1_b)
    s2, t2 = fold_bn(bn2, deconv_b)
    s3, t3 = fold_bn(bn3, conv3_b)

    # conv1: bn1 scale folded into the (Cin, Cmid) weight columns.
    w1 = jnp.transpose(conv1_w[:, :, 0, 0], (1, 0)) * s1[None, :]

    # Deconv tap row-blocks (one per shifted input), bn2 scale folded into the
    # output-channel columns.  Column blocks = parity planes [ee, eo, oe, oo].
    K = lambda i, j: deconv_w[:, :, i, j] * s2[None, :]      # (Cmid_in, Cmid_out)
    Z = jnp.zeros((Cmid, Cmid), jnp.float32)
    B0 = jnp.concatenate([K(1, 1), K(1, 2), K(2, 1), K(2, 2)], axis=1)  # h[m,  n  ]
    B1 = jnp.concatenate([Z,       K(1, 0), Z,       K(2, 0)], axis=1)  # h[m,  n+1]
    B2 = jnp.concatenate([Z,       Z,       K(0, 1), K(0, 2)], axis=1)  # h[m+1,n  ]
    B3 = jnp.concatenate([Z,       Z,       Z,       K(0, 0)], axis=1)  # h[m+1,n+1]
    wdec = jnp.stack([B0, B1, B2, B3], axis=0)               # (4, Cmid, 4*Cmid)

    # conv3: bn3 scale folded into columns, then block-diag over parity planes.
    w3 = jnp.transpose(conv3_w[:, :, 0, 0], (1, 0)) * s3[None, :]       # (Cmid, Fo)
    w3blk = jnp.kron(jnp.eye(4, dtype=jnp.float32), w3)                 # (4Cmid, 4Fo)

    return (w1.astype(jnp.bfloat16),
            wdec.astype(jnp.bfloat16),
            w3blk.astype(jnp.bfloat16),
            t1.reshape(1, Cmid).astype(jnp.float32),
            jnp.tile(t2, 4).reshape(1, 4 * Cmid).astype(jnp.float32),
            jnp.tile(t3, 4).reshape(1, 4 * Fo).astype(jnp.float32))


# ------------------------------ JAX reference --------------------------------

def reference(x, raw):
    (conv1_w, conv1_b, bn1, deconv_w, deconv_b, bn2, conv3_w, conv3_b, bn3) = raw
    dn = ('NCHW', 'OIHW', 'NCHW')
    hp = lax.Precision.HIGHEST

    def bn(y, p):
        g, b, m, v = p
        s = (g / jnp.sqrt(v + EPS))[None, :, None, None]
        return (y - m[None, :, None, None]) * s + b[None, :, None, None]

    y = lax.conv_general_dilated(x, conv1_w, (1, 1), 'VALID',
                                 dimension_numbers=dn, precision=hp)
    y = jax.nn.relu(bn(y + conv1_b[None, :, None, None], bn1))

    # ConvTranspose2d(k=3, s=2, p=1, op=1) == conv with lhs_dilation=2,
    # padding (k-1-p, k-1-p+op) = (1, 2), spatially flipped, in/out swapped.
    w = jnp.transpose(deconv_w[:, :, ::-1, ::-1], (1, 0, 2, 3))
    y = lax.conv_general_dilated(y, w, (1, 1), padding=[(1, 2), (1, 2)],
                                 lhs_dilation=(2, 2), dimension_numbers=dn,
                                 precision=hp)
    y = jax.nn.relu(bn(y + deconv_b[None, :, None, None], bn2))

    y = lax.conv_general_dilated(y, conv3_w, (1, 1), 'VALID',
                                 dimension_numbers=dn, precision=hp)
    y = jax.nn.relu(bn(y + conv3_b[None, :, None, None], bn3))
    return y


if __name__ == "__main__":
    key = jax.random.PRNGKey(0)
    kx, kp = jax.random.split(key)

    # n_filters chosen so 4*n_filters = 128 -> fully lane-dense output stores.
    N, in_channels, H, W = 2, 32, 8, 8
    n_filters = 32

    x = jax.random.normal(kx, (N, in_channels, H, W), jnp.float32)   # NCHW
    raw = make_raw_params(kp, in_channels, n_filters)
    kparams = fold_params(raw)

    # h_tile=4 exercises the H-tile grid axis, the 1-row halo read and the
    # last-tile halo zeroing; batch_block defaults to 2 here (M = Nb*Ht*W).
    out = decoder_block_pallas(x, kparams, h_tile=4)
    out = jax.block_until_ready(out)
    assert out.shape == (N, n_filters, 2 * H, 2 * W)

    ref = jax.block_until_ready(reference(x, raw))
    # bf16 MXU inputs + bf16 kernel output -> relaxed tolerance vs f32 reference.
    np.testing.assert_allclose(np.asarray(out), np.asarray(ref),
                               rtol=3e-2, atol=3e-2)
    print("KERNEL_OK")
</pallas_src>

<mosaic_0001>
module attributes {stable_mosaic.version = 11 : i64} {
  func.func @decoder_block_kernel(%arg0: i32, %arg1: i32, %arg2: memref<2x4x8x32xbf16, #tpu.memory_space<vmem>>, %arg3: memref<2x1x8x32xbf16, #tpu.memory_space<vmem>>, %arg4: memref<32x8xbf16, #tpu.memory_space<vmem>>, %arg5: memref<4x8x32xbf16, #tpu.memory_space<vmem>>, %arg6: memref<32x128xbf16, #tpu.memory_space<vmem>>, %arg7: memref<1x8xf32, #tpu.memory_space<vmem>>, %arg8: memref<1x32xf32, #tpu.memory_space<vmem>>, %arg9: memref<1x128xf32, #tpu.memory_space<vmem>>, %arg10: memref<2x4x8x128xbf16, #tpu.memory_space<vmem>>) attributes {dimension_semantics = [#tpu.dimension_semantics<parallel>, #tpu.dimension_semantics<parallel>], iteration_bounds = array<i64: 1, 2>, scalar_prefetch = 0 : i64, scratch_operands = 0 : i64, tpu.core_type = #tpu.core_type<tc>, window_params = [{transform_indices = @transform_0, window_bounds = array<i64: 2, 4, 8, 32>}, {transform_indices = @transform_1, window_bounds = array<i64: 2, 1, 8, 32>}, {pipeline_mode = #tpu.pipeline_mode<synchronous>, transform_indices = @transform_2, window_bounds = array<i64: 32, 8>}, {pipeline_mode = #tpu.pipeline_mode<synchronous>, transform_indices = @transform_3, window_bounds = array<i64: 4, 8, 32>}, {pipeline_mode = #tpu.pipeline_mode<synchronous>, transform_indices = @transform_4, window_bounds = array<i64: 32, 128>}, {pipeline_mode = #tpu.pipeline_mode<synchronous>, transform_indices = @transform_5, window_bounds = array<i64: 1, 8>}, {pipeline_mode = #tpu.pipeline_mode<synchronous>, transform_indices = @transform_6, window_bounds = array<i64: 1, 32>}, {pipeline_mode = #tpu.pipeline_mode<synchronous>, transform_indices = @transform_7, window_bounds = array<i64: 1, 128>}, {transform_indices = @transform_8, window_bounds = array<i64: 2, 4, 8, 128>}]} {
    %c0 = arith.constant 0 : index
    %c0_0 = arith.constant 0 : index
    %c0_1 = arith.constant 0 : index
    %c0_2 = arith.constant 0 : index
    %0 = vector.load %arg2[%c0, %c0_0, %c0_1, %c0_2] : memref<2x4x8x32xbf16, #tpu.memory_space<vmem>>, vector<2x4x8x32xbf16>
    %1 = vector.shape_cast %0 : vector<2x4x8x32xbf16> to vector<64x32xbf16>
    %c0_3 = arith.constant 0 : index
    %c0_4 = arith.constant 0 : index
    %2 = vector.load %arg4[%c0_3, %c0_4] : memref<32x8xbf16, #tpu.memory_space<vmem>>, vector<32x8xbf16>
    %cst = arith.constant dense<0.000000e+00> : vector<64x8xf32>
    %3 = tpu.matmul %1, %2, %cst {dimension_numbers = #tpu.dot_dimension_numbers<[1], [0], [0], [1], [0, 0, 1, 1], [], []>} : vector<64x32xbf16>, vector<32x8xbf16>, vector<64x8xf32> -> vector<64x8xf32>
    %c0_5 = arith.constant 0 : index
    %c0_6 = arith.constant 0 : index
    %4 = vector.load %arg7[%c0_5, %c0_6] : memref<1x8xf32, #tpu.memory_space<vmem>>, vector<1x8xf32>
    %5 = vector.broadcast %4 : vector<1x8xf32> to vector<64x8xf32>
    %6 = arith.addf %3, %5 : vector<64x8xf32>
    %cst_7 = arith.constant 0.000000e+00 : f32
    %7 = vector.broadcast %cst_7 : f32 to vector<64x8xf32>
    %8 = arith.maximumf %6, %7 : vector<64x8xf32>
    %c0_8 = arith.constant 0 : index
    %c0_9 = arith.constant 0 : index
    %c0_10 = arith.constant 0 : index
    %c0_11 = arith.constant 0 : index
    %9 = vector.load %arg3[%c0_8, %c0_9, %c0_10, %c0_11] : memref<2x1x8x32xbf16, #tpu.memory_space<vmem>>, vector<2x1x8x32xbf16>
    %10 = vector.shape_cast %9 : vector<2x1x8x32xbf16> to vector<16x32xbf16>
    %c0_12 = arith.constant 0 : index
    %c0_13 = arith.constant 0 : index
    %11 = vector.load %arg4[%c0_12, %c0_13] : memref<32x8xbf16, #tpu.memory_space<vmem>>, vector<32x8xbf16>
    %cst_14 = arith.constant dense<0.000000e+00> : vector<16x8xf32>
    %12 = tpu.matmul %10, %11, %cst_14 {dimension_numbers = #tpu.dot_dimension_numbers<[1], [0], [0], [1], [0, 0, 1, 1], [], []>} : vector<16x32xbf16>, vector<32x8xbf16>, vector<16x8xf32> -> vector<16x8xf32>
    %c0_15 = arith.constant 0 : index
    %c0_16 = arith.constant 0 : index
    %13 = vector.load %arg7[%c0_15, %c0_16] : memref<1x8xf32, #tpu.memory_space<vmem>>, vector<1x8xf32>
    %14 = vector.broadcast %13 : vector<1x8xf32> to vector<16x8xf32>
    %15 = arith.addf %12, %14 : vector<16x8xf32>
    %cst_17 = arith.constant 0.000000e+00 : f32
    %16 = vector.broadcast %cst_17 : f32 to vector<16x8xf32>
    %17 = arith.maximumf %15, %16 : vector<16x8xf32>
    %c1_i32 = arith.constant 1 : i32
    %18 = arith.addi %arg1, %c1_i32 : i32
    %c2_i32 = arith.constant 2 : i32
    %19 = arith.cmpi slt, %18, %c2_i32 : i32
    %20 = arith.extui %19 : i1 to i32
    %21 = arith.sitofp %20 : i32 to f32
    %22 = vector.broadcast %21 : f32 to vector<16x8xf32>
    %23 = arith.mulf %17, %22 : vector<16x8xf32>
    %24 = arith.truncf %8 : vector<64x8xf32> to vector<64x8xbf16>
    %25 = vector.shape_cast %24 : vector<64x8xbf16> to vector<2x4x8x8xbf16>
    %26 = arith.truncf %23 : vector<16x8xf32> to vector<16x8xbf16>
    %27 = vector.shape_cast %26 : vector<16x8xbf16> to vector<2x1x8x8xbf16>
    %cst_18 = arith.constant 0.000000e+00 : bf16
    %28 = vector.broadcast %cst_18 : bf16 to vector<2x4x1x8xbf16>
    %29 = vector.extract_strided_slice %25 {offsets = [0, 0, 1, 0], sizes = [2, 4, 7, 8], strides = [1, 1, 1, 1]} : vector<2x4x8x8xbf16> to vector<2x4x7x8xbf16>
    %30 = tpu.concatenate %29, %28 in 2 : vector<2x4x7x8xbf16>, vector<2x4x1x8xbf16> -> vector<2x4x8x8xbf16>
    %31 = vector.extract_strided_slice %25 {offsets = [0, 1, 0, 0], sizes = [2, 3, 8, 8], strides = [1, 1, 1, 1]} : vector<2x4x8x8xbf16> to vector<2x3x8x8xbf16>
    %32 = tpu.concatenate %31, %27 in 1 : vector<2x3x8x8xbf16>, vector<2x1x8x8xbf16> -> vector<2x4x8x8xbf16>
    %33 = vector.extract_strided_slice %32 {offsets = [0, 0, 1, 0], sizes = [2, 4, 7, 8], strides = [1, 1, 1, 1]} : vector<2x4x8x8xbf16> to vector<2x4x7x8xbf16>
    %34 = tpu.concatenate %33, %28 in 2 : vector<2x4x7x8xbf16>, vector<2x4x1x8xbf16> -> vector<2x4x8x8xbf16>
    %35 = vector.shape_cast %25 : vector<2x4x8x8xbf16> to vector<64x8xbf16>
    %c0_19 = arith.constant 0 : index
    %c0_20 = arith.constant 0 : index
    %c0_21 = arith.constant 0 : index
    %36 = vector.load %arg5[%c0_19, %c0_20, %c0_21] : memref<4x8x32xbf16, #tpu.memory_space<vmem>>, vector<1x8x32xbf16>
    %37 = vector.shape_cast %36 : vector<1x8x32xbf16> to vector<8x32xbf16>
    %cst_22 = arith.constant dense<0.000000e+00> : vector<64x32xf32>
    %38 = tpu.matmul %35, %37, %cst_22 {dimension_numbers = #tpu.dot_dimension_numbers<[1], [0], [0], [1], [0, 0, 1, 1], [], []>} : vector<64x8xbf16>, vector<8x32xbf16>, vector<64x32xf32> -> vector<64x32xf32>
    %39 = vector.shape_cast %30 : vector<2x4x8x8xbf16> to vector<64x8xbf16>
    %c1 = arith.constant 1 : index
    %c0_23 = arith.constant 0 : index
    %c0_24 = arith.constant 0 : index
    %40 = vector.load %arg5[%c1, %c0_23, %c0_24] : memref<4x8x32xbf16, #tpu.memory_space<vmem>>, vector<1x8x32xbf16>
    %41 = vector.shape_cast %40 : vector<1x8x32xbf16> to vector<8x32xbf16>
    %cst_25 = arith.constant dense<0.000000e+00> : vector<64x32xf32>
    %42 = tpu.matmul %39, %41, %cst_25 {dimension_numbers = #tpu.dot_dimension_numbers<[1], [0], [0], [1], [0, 0, 1, 1], [], []>} : vector<64x8xbf16>, vector<8x32xbf16>, vector<64x32xf32> -> vector<64x32xf32>
    %43 = arith.addf %38, %42 : vector<64x32xf32>
    %44 = vector.shape_cast %32 : vector<2x4x8x8xbf16> to vector<64x8xbf16>
    %c2 = arith.constant 2 : index
    %c0_26 = arith.constant 0 : index
    %c0_27 = arith.constant 0 : index
    %45 = vector.load %arg5[%c2, %c0_26, %c0_27] : memref<4x8x32xbf16, #tpu.memory_space<vmem>>, vector<1x8x32xbf16>
    %46 = vector.shape_cast %45 : vector<1x8x32xbf16> to vector<8x32xbf16>
    %cst_28 = arith.constant dense<0.000000e+00> : vector<64x32xf32>
    %47 = tpu.matmul %44, %46, %cst_28 {dimension_numbers = #tpu.dot_dimension_numbers<[1], [0], [0], [1], [0, 0, 1, 1], [], []>} : vector<64x8xbf16>, vector<8x32xbf16>, vector<64x32xf32> -> vector<64x32xf32>
    %48 = arith.addf %43, %47 : vector<64x32xf32>
    %49 = vector.shape_cast %34 : vector<2x4x8x8xbf16> to vector<64x8xbf16>
    %c3 = arith.constant 3 : index
    %c0_29 = arith.constant 0 : index
    %c0_30 = arith.constant 0 : index
    %50 = vector.load %arg5[%c3, %c0_29, %c0_30] : memref<4x8x32xbf16, #tpu.memory_space<vmem>>, vector<1x8x32xbf16>
    %51 = vector.shape_cast %50 : vector<1x8x32xbf16> to vector<8x32xbf16>
    %cst_31 = arith.constant dense<0.000000e+00> : vector<64x32xf32>
    %52 = tpu.matmul %49, %51, %cst_31 {dimension_numbers = #tpu.dot_dimension_numbers<[1], [0], [0], [1], [0, 0, 1, 1], [], []>} : vector<64x8xbf16>, vector<8x32xbf16>, vector<64x32xf32> -> vector<64x32xf32>
    %53 = arith.addf %48, %52 : vector<64x32xf32>
    %c0_32 = arith.constant 0 : index
    %c0_33 = arith.constant 0 : index
    %54 = vector.load %arg8[%c0_32, %c0_33] : memref<1x32xf32, #tpu.memory_space<vmem>>, vector<1x32xf32>
    %55 = vector.broadcast %54 : vector<1x32xf32> to vector<64x32xf32>
    %56 = arith.addf %53, %55 : vector<64x32xf32>
    %cst_34 = arith.constant 0.000000e+00 : f32
    %57 = vector.broadcast %cst_34 : f32 to vector<64x32xf32>
    %58 = arith.maximumf %56, %57 : vector<64x32xf32>
    %59 = arith.truncf %58 : vector<64x32xf32> to vector<64x32xbf16>
    %c0_35 = arith.constant 0 : index
    %c0_36 = arith.constant 0 : index
    %60 = vector.load %arg6[%c0_35, %c0_36] : memref<32x128xbf16, #tpu.memory_space<vmem>>, vector<32x128xbf16>
    %cst_37 = arith.constant dense<0.000000e+00> : vector<64x128xf32>
    %61 = tpu.matmul %59, %60, %cst_37 {dimension_numbers = #tpu.dot_dimension_numbers<[1], [0], [0], [1], [0, 0, 1, 1], [], []>} : vector<64x32xbf16>, vector<32x128xbf16>, vector<64x128xf32> -> vector<64x128xf32>
    %c0_38 = arith.constant 0 : index
    %c0_39 = arith.constant 0 : index
    %62 = vector.load %arg9[%c0_38, %c0_39] : memref<1x128xf32, #tpu.memory_space<vmem>>, vector<1x128xf32>
    %63 = vector.broadcast %62 : vector<1x128xf32> to vector<64x128xf32>
    %64 = arith.addf %61, %63 : vector<64x128xf32>
    %cst_40 = arith.constant 0.000000e+00 : f32
    %65 = vector.broadcast %cst_40 : f32 to vector<64x128xf32>
    %66 = arith.maximumf %64, %65 : vector<64x128xf32>
    %67 = arith.truncf %66 : vector<64x128xf32> to vector<64x128xbf16>
    %68 = vector.shape_cast %67 : vector<64x128xbf16> to vector<2x4x8x128xbf16>
    %c0_41 = arith.constant 0 : index
    %c0_42 = arith.constant 0 : index
    %c0_43 = arith.constant 0 : index
    %c0_44 = arith.constant 0 : index
    %69 = vector.load %arg10[%c0_41, %c0_42, %c0_43, %c0_44] : memref<2x4x8x128xbf16, #tpu.memory_space<vmem>>, vector<2x4x8x128xbf16>
    tpu.vector_store %arg10[%c0_41, %c0_42, %c0_43, %c0_44], %68 {strides = array<i32>} : memref<2x4x8x128xbf16, #tpu.memory_space<vmem>>, vector<2x4x8x128xbf16>,
    return
  }
  func.func @transform_0(%arg0: i32, %arg1: i32) -> (i32, i32, i32, i32) {
    %c0_i32 = arith.constant 0 : i32
    %c0_i32_0 = arith.constant 0 : i32
    %c0_i32_1 = arith.constant 0 : i32
    return %arg0, %arg1, %c0_i32, %c0_i32_0 : i32, i32, i32, i32
  }
  func.func @transform_1(%arg0: i32, %arg1: i32) -> (i32, i32, i32, i32) {
    %c1_i32 = arith.constant 1 : i32
    %0 = arith.addi %arg1, %c1_i32 : i32
    %c4_i32 = arith.constant 4 : i32
    %1 = arith.muli %0, %c4_i32 : i32
    %c7_i32 = arith.constant 7 : i32
    %2 = arith.minsi %1, %c7_i32 : i32
    %c0_i32 = arith.constant 0 : i32
    %c0_i32_0 = arith.constant 0 : i32
    %c0_i32_1 = arith.constant 0 : i32
    return %arg0, %2, %c0_i32, %c0_i32_0 : i32, i32, i32, i32
  }
  func.func @transform_2(%arg0: i32, %arg1: i32) -> (i32, i32) {
    %c0_i32 = arith.constant 0 : i32
    %c0_i32_0 = arith.constant 0 : i32
    %c0_i32_1 = arith.constant 0 : i32
    return %c0_i32, %c0_i32_0 : i32, i32
  }
  func.func @transform_3(%arg0: i32, %arg1: i32) -> (i32, i32, i32) {
    %c0_i32 = arith.constant 0 : i32
    %c0_i32_0 = arith.constant 0 : i32
    %c0_i32_1 = arith.constant 0 : i32
    %c0_i32_2 = arith.constant 0 : i32
    return %c0_i32, %c0_i32_0, %c0_i32_1 : i32, i32, i32
  }
  func.func @transform_4(%arg0: i32, %arg1: i32) -> (i32, i32) {
    %c0_i32 = arith.constant 0 : i32
    %c0_i32_0 = arith.constant 0 : i32
    %c0_i32_1 = arith.constant 0 : i32
    return %c0_i32, %c0_i32_0 : i32, i32
  }
  func.func @transform_5(%arg0: i32, %arg1: i32) -> (i32, i32) {
    %c0_i32 = arith.constant 0 : i32
    %c0_i32_0 = arith.constant 0 : i32
    %c0_i32_1 = arith.constant 0 : i32
    return %c0_i32, %c0_i32_0 : i32, i32
  }
  func.func @transform_6(%arg0: i32, %arg1: i32) -> (i32, i32) {
    %c0_i32 = arith.constant 0 : i32
    %c0_i32_0 = arith.constant 0 : i32
    %c0_i32_1 = arith.constant 0 : i32
    return %c0_i32, %c0_i32_0 : i32, i32
  }
  func.func @transform_7(%arg0: i32, %arg1: i32) -> (i32, i32) {
    %c0_i32 = arith.constant 0 : i32
    %c0_i32_0 = arith.constant 0 : i32
    %c0_i32_1 = arith.constant 0 : i32
    return %c0_i32, %c0_i32_0 : i32, i32
  }
  func.func @transform_8(%arg0: i32, %arg1: i32) -> (i32, i32, i32, i32) {
    %c0_i32 = arith.constant 0 : i32
    %c0_i32_0 = arith.constant 0 : i32
    %c0_i32_1 = arith.constant 0 : i32
    return %arg0, %arg1, %c0_i32, %c0_i32_0 : i32, i32, i32, i32
  }
}

</mosaic_0001>

<bundles_post_ra>
// kernel: tpu_custom_call.1
= control target key start
LH: loop header
LB: loop body
LE: loop exit
PB: predicated region body
PF: predicated region fallthrough
CT: control target
= control target key end

     0   :  { %s2452_s0 = inlined_call_operand.hbm [shape: bf16[2,8,8,32], index: 0, kind: input, shape index: {}]   ;;  %s2453_s1 = inlined_call_operand.hbm [shape: bf16[2,8,8,32], index: 1, kind: input, shape index: {}]   ;;  %s2454_s2 = inlined_call_operand.vmem [shape: bf16[32,8], index: 2, kind: input, shape index: {}]   ;;  %s2455_s3 = inlined_call_operand.vmem [shape: bf16[4,8,32], index: 3, kind: input, shape index: {}]   ;;  %s2456_s4 = inlined_call_operand.hbm [shape: bf16[32,128], index: 4, kind: input, shape index: {}]   ;;  %s2457_s5 = inlined_call_operand.vmem [shape: f32[1,8], index: 5, kind: input, shape index: {}]   ;;  %s2458_s6 = inlined_call_operand.vmem [shape: f32[1,32], index: 6, kind: input, shape index: {}]   ;;  %s2459_s7 = inlined_call_operand.vmem [shape: f32[1,128], index: 7, kind: input, shape index: {}]   ;;  %s2460_s8 = inlined_call_operand.hbm [shape: bf16[2,8,8,128], index: 8, kind: output, shape index: {}]  }
   0x1   :  { %2474 = sst [smem:[#allocation26_spill]] %s2452_s0 }
   0x2   :  { %2475 = sst [smem:[#allocation27_spill]] %s2455_s3 }
   0x3   :  { %2476 = sst [smem:[#allocation28_spill]] %s2456_s4 }
   0x4   :  { %2477 = sst [smem:[#allocation29_spill]] %s2457_s5 }
   0x5   :  { %2478 = sst [smem:[#allocation30_spill]] %s2458_s6 }
   0x6   :  { %2479 = sst [smem:[#allocation31_spill]] %s2459_s7 }
   0x7   :  { %2480 = sst [smem:[#allocation32_spill]] %s2460_s8 }
   0x8   :  { %13 = vsyncpa [#allocation3], 0 }
   0x9   :  { %15 = vsyncpa [#allocation3 + $0x1], 0 }
   0xa   :  { %16 = vsyncpa [#allocation6], 0 }
   0xb   :  { %18 = vsyncpa [#allocation6 + $0x1], 0 }
   0xc   :  { %19 = vsyncpa [#allocation4], 0 }
   0xd   :  { %21 = vsyncpa [#allocation4 + $0x1], 0  ;;  %s2073_s27 = smov 0   ;;  %s2075_s28 = smov 0  }
   0xe   :  { %s2077_s29 = smov 0   ;;  %s2079_s30 = smov 0  }
   0xf   :  { %s2081_s9 = smov 0   ;;  %s2083_s10 = smov 0  }
  0x10   :  { %s2085_s11 = smov 0   ;;  %s2087_s12 = smov 0  }
  0x11   :  { %s2089_s13 = smov 0  }
  0x12 LB: > { %2481 = sst [smem:[#allocation18_spill]] %s1986_s30  ;;  %s2119_s14 = sadd.s32 4294967295, %s2006_s13   ;;  %s2006_s13 = sphi %s2089_s13, %s27_s13   ;;  %s2002_s12 = sphi %s2087_s12, %s2518_s12   ;;  %s1998_s11 = sphi %s2085_s11, %s2517_s11   ;;  %s1994_s10 = sphi %s2083_s10, %s2516_s10   ;;  %s1990_s9 = sphi %s2081_s9, %s2523_s9   ;;  %s1986_s30 = sphi %s2079_s30, %s2522_s30   ;;  %s1982_s29 = sphi %s2077_s29, %s2521_s29   ;;  %s1978_s28 = sphi %s2075_s28, %s2520_s28   ;;  %s1974_s27 = sphi %s2073_s27, %s2519_s27  }
  0x13   : > { %2482 = sst [smem:[#allocation19_spill]] %s1994_s10  ;;  %s1482_s15 = sadd.s32 4294967294, %s2006_s13  }
  0x14   : > { %2483 = sst [smem:[#allocation20_spill]] %s2002_s12  ;;  %s36_s16 = sadd.s32 1, %s2002_s12 }
  0x15   : > { %s48_s17 = sadd.s32 1, %s1994_s10  ;;  %p37_p0 = scmp.ge.s32.totalorder %s36_s16, 2 }
  0x16   : > { %p55_p1 = scmp.ne.s32.totalorder %s1994_s10, %s1990_s9  ;;  %p56_p2 = scmp.eq.s32.totalorder %s2006_s13, 0 }
  0x17   : > { %p2461_p3 = scmp.ne.s32.totalorder %s1990_s9, %s1986_s30  ;;  %s2525_s16 = smov (%p37_p0, %s36_s16), 0 }
  0x18   : > { %2484 = sst [smem:[#allocation21_spill]] %s2525_s16  ;;  %p2136_p4 = por %p56_p2, %p55_p1 }
  0x19   : > { %p62_p5 = scmp.eq.s32.totalorder %s2119_s14, 0  ;;  %s44_s19 = ssub.s32 %s2002_s12, %s2525_s16 }
  0x1a   : > { %s1573_s20 = sshll.u32 %s2002_s12, 2  ;;  %p46_p6 = scmp.eq.s32.totalorder %s44_s19, 0 }
  0x1b   : > { %p2149_p7 = por %p62_p5, %p2461_p3  ;;  %s1574_s22 = sadd.s32 4, %s1573_s20 }
  0x1c   : > { %s1575_s23 = sshll.u32 %s2525_s16, 2  ;;  %p73_p8 = scmp.lt.s32.totalorder %s1574_s22, 7 }
  0x1d   : > { %s2486_s21 = scalar_select %p2149_p7, 1, 0 }
  0x1e   : > { %s2155_s24 = scalar_select %p46_p6, %s1994_s10, %s48_s17  }
  0x1f   : > { %s1576_s25 = sadd.s32 4, %s1575_s23  ;;  %s84_s26 = sadd.s32 1, %s1982_s29 }
  0x20   : > { %2487 = sst [smem:[#allocation22_spill]] %s2155_s24  ;;  %p77_p9 = scmp.lt.s32.totalorder %s1576_s25, 7 }
  0x21   : > { %s2527_s22 = smov (!%p73_p8, %s1574_s22), 7  ;;  %p91_p10 = scmp.ne.s32.totalorder %s1982_s29, %s1978_s28 }
  0x22   : > { %s2529_s25 = smov (!%p77_p9, %s1576_s25), 7  ;;  %p97_p11 = scmp.ne.s32.totalorder %s1978_s28, %s1974_s27 }
  0x23   : > { %s80_s19 = ssub.s32 %s2527_s22, %s2529_s25  ;;  %p249_p12 = scmp.eq.s32.totalorder %s2119_s14, 1 }
  0x24   : > { %p82_p13 = scmp.eq.s32.totalorder %s80_s19, 0  ;;  %p2168_p0 = por %p91_p10, %p56_p2 }
  0x25   : > { %p2174_p6 = por %p97_p11, %p62_p5  ;;  %p2181_p8 = por %p249_p12, %p55_p1 }
  0x26   : > { %s2488_s17 = scalar_select %p2168_p0, 1, 0 }
  0x27   : > { %s2489_s20 = scalar_select %p2174_p6, 1, 0 }
  0x28   : > { %s2490_s23 = scalar_select %p2181_p8, 1, 0 }
  0x29   : > { %s2186_s27 = scalar_select %p82_p13, %s1982_s29, %s84_s26  }
  0x2a   : > { %2491 = sst [smem:[#allocation23_spill]] %s2490_s23  ;;  %p255_p9 = scmp.eq.s32.totalorder %s1482_s15, 1 }
  0x2b   : > { %2492 = sst [smem:[#allocation24_spill]] %s2186_s27  ;;  %p1485_p3 = scmp.ge.s32.totalorder %s2006_s13, 1 }
  0x2c   : > { %p262_p7 = scmp.lt.s32.totalorder %s2006_s13, 3  ;;  %p2493_p2 = scmp.ne.s32.totalorder %s1990_s9, %s1986_s30 }
  0x2d   : > { %s2008_s16 = smov [#allocation7]  }
  0x2e   : > { %p2195_p10 = por %p255_p9, %p2493_p2  ;;  %p2199_p11 = pnand %p1485_p3, %p262_p7 }
  0x2f   : > { %s280_s24 = sshll.u32 %s2008_s16, 4  ;;  %s281_s24 = int_to_ptr.vmem [resolvable:$true] %s280_s24 }
  0x30   : > { %s2494_s25 = scalar_select %p2195_p10, 1, 0 }
  0x31   : > { %p1757_p1 = pneg %p2199_p11  ;;  %s1879_s15 = scalar_lea.vmem %s281_s24, 256 }
  0x32   : > { %2495 = sst [smem:[#allocation25_spill]] %s2494_s25  ;;  %p1880_p8 = scmp.ne.s32.totalorder %s281_s24, %s1879_s15 }
  0x33   : > { %p1758_p12 = pnand %p1757_p1, %p62_p5  ;;  %p1887_p2 = scmp.lt.s32.totalorder %s281_s24, %s281_s24 }
  0x34   : > { %p1888_p0 = scmp.lt.s32.totalorder %s1879_s15, %s1879_s15 }
  0x35   : > { %p1870_p13 = pneg %p1758_p12 }
  0x36   : > { %p1889_p10 = por %p1888_p0, %p1887_p2 }
  0x37   : > { %p1882_p6 = pnand %p1880_p8, %p1870_p13 }
  0x39   : > { %p1883_p9 = pneg %p1882_p6 }
  0x3b   : > { %p1890_p3 = pnand %p1889_p10, %p1883_p9 }
  0x3d   : > { %1893 = shalt.err (!%p1890_p3)
}
  0x3e   : > { %s2009_s26 = smov 64   ;;  %s2010_s27 = smov 4  }
  0x3f   : > { %s2497_s4 = sld [smem:[#allocation28_spill]]  ;;  %p1487_p7 = scmp.ge.s32.totalorder %s2006_s13, 2 }
  0x41   : > { %299 = sbr.rel (%p1487_p7) target bundleno = 101 (0x65), region = 40 }
  0x45   : > { %1760 = dma.hbm_to_vmem [thread:$0]  (!%p1758_p12), %s2497_s4, 256, %s281_s24, [#allocation6], %s2009_s26, %s2009_s26, %s2010_s27  }
  0x46   : > { %s303_s16 = sand.u32 1, %s1994_s10   ;;  %s1577_s8 = sshll.u32 %s2002_s12, 8 }
  0x47   : > { %s1488_s15 = sshll.u32 %s303_s16, 5  ;;  %s2498_s0 = sld [smem:[#allocation26_spill]] }
  0x48   : > { %s1736_s23 = scalar_select %p2136_p4, [#allocation0], [#allocation13] }
  0x49   : > { %s307_s26 = scalar_lea.vmem [#allocation2], %s1488_s15  ;;  %s2011_s7 = smov 512  }
  0x4a   : > { %s321_s25 = sld [smem:[%s1736_s23]]   ;;  %s329_s4 = sshll.u32 %s307_s26, 4  ;;  %s330_s4 = int_to_ptr.vmem [resolvable:$true] %s329_s4 }
  0x4b   : > { %1737 = sst [smem:[#allocation10]] (%p2136_p4), %s2011_s7  ;;  %s2012_s6 = smov 256  }
  0x4c   : > { %1738 = sst [smem:[#allocation10 + $0x1]] (%p2136_p4), %s2012_s6  ;;  %s2013_s10 = smov 4  }
  0x4d   : > { %s316_s27 = scalar_lea.hbm %s2498_s0, %s1577_s8  ;;  %1739 = sst [smem:[#allocation10 + $0x2]] (%p2136_p4), %s2013_s10 }
  0x4e   : > { %s2014_s12 = smov 64   ;;  %1742 = sst [smem:[#allocation10 + $0x5]] (%p2136_p4), %s2013_s10 }
  0x4f   : > { %1740 = sst [smem:[#allocation10 + $0x3]] (%p2136_p4), %s2014_s12  ;;  %s304_s15 = scalar_lea.sflag [#allocation3], %s303_s16 }
  0x50   : > { %1741 = sst [smem:[#allocation10 + $0x4]] (%p2136_p4), %s2014_s12  ;;  %s1491_s8 = sshll.u32 %s321_s25, 26 }
  0x51   : > { %s1492_s23 = sadd.s32 134217728, %s1491_s8  ;;  %s2015_s30 = smov 131072  }
  0x52   : > { %1743 = dma.general (%p2136_p4), %s316_s27, 512, %s330_s4, %s304_s15, %s2015_s30, [#allocation10], %s1492_s23, 0  }
  0x53   : > { %s352_s6 = sand.u32 1, %s2006_s13   ;;  %s354_s7 = sand.u32 1, %s1982_s29  }
  0x54   : > { %s1493_s24 = sshll.u32 %s354_s7, 3  ;;  %s1495_s26 = sshll.u32 %s2527_s22, 6 }
  0x55   : > { %s368_s12 = scalar_lea.hbm %s2453_s1, %s1495_s26  ;;  %s356_s25 = scalar_lea.vmem [#allocation5], %s1493_s24 }
  0x56   : > { %s369_s3 = sshll.u32 %s356_s25, 4  ;;  %s353_s10 = scalar_lea.sflag [#allocation6], %s352_s6  ;;  %s370_s3 = int_to_ptr.vmem [resolvable:$true] %s369_s3 }
  0x57   : > { %s1906_s16 = scalar_lea.vmem %s370_s3, 128  ;;  %p2499_p6 = scmp.ne.s32.totalorder %s2488_s17, 0 }
  0x58   : > { %p1907_p0 = scmp.ne.s32.totalorder %s370_s3, %s1906_s16  ;;  %s2016_s4 = smov [#allocation5]  }
  0x59   : > { %s1910_s18 = sshll.u32 %s2016_s4, 4  ;;  %s1911_s18 = int_to_ptr.vmem [resolvable:$false] %s1910_s18 }
  0x5a   : > { %p1908_p4 = pnand %p1907_p0, %p2499_p6  ;;  %s1912_s27 = scalar_lea.vmem %s1911_s18, 256 }
  0x5b   : > { %p1913_p10 = scmp.lt.s32.totalorder %s370_s3, %s1911_s18  ;;  %p1914_p1 = scmp.lt.s32.totalorder %s1912_s27, %s1906_s16 }
  0x5c   : > { %p1909_p8 = pneg %p1908_p4 }
  0x5d   : > { %p1915_p12 = por %p1914_p1, %p1913_p10 }
  0x5f   : > { %p1916_p13 = pnand %p1915_p12, %p1909_p8 }
  0x61   : > { %1919 = shalt.err (!%p1916_p13)
}
  0x62   : > { %s2017_s0 = smov 512   ;;  %s2018_s5 = smov 64  }
  0x63   : > { %s2019_s22 = smov 4  }
  0x64   : > { %1744 = dma.hbm_to_vmem [thread:$0]  (%p2499_p6), %s368_s12, 128, %s370_s3, %s353_s10, %s2017_s0, %s2018_s5, %s2019_s22  }
  0x65 PF: > { %381 = sbr.rel (%p2199_p11) target bundleno = 795 (0x31b), region = 52  ;;  %s2247_s8 = sand.u32 (!%p2199_p11), 1, %s1990_s9  }
  0x66   : > { %s1497_s23 = sshll.u32 (!%p2199_p11), %s2247_s8, 5  ;;  %s384_s15 = scalar_lea.sflag (!%p2199_p11), [#allocation3], %s2247_s8 }
  0x67   : > { %s2253_s30 = scalar_lea.vmem (!%p2199_p11), [#allocation2], %s1497_s23  ;;  %p2500_p9 = scmp.ne.s32.totalorder (!%p2199_p11), %s2486_s21, 0 }
  0x6a   : > { %1957 = dma.done.wait (%p2500_p9), %s384_s15, 512  }
  0x6b   : > { %1959 = vsyncadd (%p2500_p9), %s384_s15, 4294966784  ;;  %s392_s3 = sand.u32 1, %s2119_s14   ;;  %s394_s17 = sand.u32 1, %s1978_s28  }
  0x6c   : > { %s1498_s19 = sshll.u32 %s394_s17, 3  ;;  %s393_s6 = scalar_lea.sflag [#allocation6], %s392_s3 }
  0x6d   : > { %s396_s7 = scalar_lea.vmem [#allocation5], %s1498_s19  ;;  %p2501_p11 = scmp.ne.s32.totalorder %s2489_s20, 0 }
  0x6f   : > { %1961 = dma.done.wait (%p2501_p11), %s393_s6, 128  }
  0x70   : > { %1963 = vsyncadd (%p2501_p11), %s393_s6, 4294967168 }
  0x71   : > { %1965 = dma.done.wait (%p62_p5), [#allocation6], 256  }
  0x72   : > { %1967 = vsyncadd (%p62_p5), [#allocation6], 4294967040  ;;  %v2020_v0 = vmov 0.0   ;;  %vm2021_vm0 = vmmov 0   ;;  %v1859_v1 = vld [vmem:[%s2454_s2 + $0x8] sm:$0xff]   ;;  %v1860_v2 = vld [vmem:[%s2454_s2] sm:$0xff]  }
  0x73   : > { %1670 = vmatprep.subr.bf16.mxu1 %v2020_v0  ;;  %1674 = vmatprep.mubr.msk.bf16.mxu1 %vm2021_vm0, %v2020_v0  ;;  %vm499_vm1 = vcmask 261120   ;;  %v1861_v3 = vld [vmem:[%s2253_s30] sm:$0xff]   ;;  %v1863_v5 = vld [vmem:[%s2253_s30 + $0x8] sm:$0xff]   ;;  %v1864_v6 = vld [vmem:[%s2253_s30 + $0x10] sm:$0xff]   ;;  %vm737_vm2 = vcmask 1043456   ;;  %s2502_s25 = sld [smem:[#allocation27_spill]] }
  0x74   : > { %1658 = vmatprep.subr.bf16.mxu0 %v1859_v1  ;;  %1671 = vmatpush3.bf16.msra.mxu1 %v1859_v1  ;;  %v1862_v4 = vld [vmem:[%s396_s7] sm:$0xff]   ;;  %v1865_v7 = vld [vmem:[%s2253_s30 + $0x18] sm:$0xff]   ;;  %s638_s5 = sadd.s32 1, %s1998_s11  ;;  %s2503_s3 = sld [smem:[#allocation29_spill]]  ;;  %vm738_vm3 = vsmask.f32 3328 }
  0x75   : > { %1659 = vmatpush3.bf16.msra.mxu0 %v1859_v1  ;;  %1672 = vmatprep.subr.bf16.mxu1 %v2020_v0  ;;  %p639_p5 = scmp.lt.s32.totalorder %s638_s5, 2  ;;  %vm791_vm4 = vcmask 64512   ;;  %vm2335_vm5 = vmand %vm737_vm2, %vm738_vm3  ;;  %s2506_s7 = sld [smem:[#allocation30_spill]] }
  0x76   : > { %1660 = vmatprep.subr.bf16.mxu0 %v1860_v2  ;;  %1662 = vmatprep.mubr.msk.bf16.mxu0 %vm499_vm1, %v1861_v3  ;;  %s2507_s26 = sld [smem:[#allocation31_spill]]  ;;  %s437_s20 = scalar_lea.vmem [#allocation8], %s1497_s23 }
  0x77   : > { %s640_s22 = scalar_select %p639_p5, 1, 0 }
  0x78   : > { %1673 = vmatpush3.bf16.msra.mxu1 %v1860_v2  ;;  %s1321_s14 = scalar_lea.sflag [#allocation4], %s2247_s8 }
  0x79   : > { %1661 = vmatpush3.bf16.msra.mxu0 %v1860_v2  ;;  %v768_v8 = vld [vmem:[%s2502_s25] sm:$0xf]  ;;  %v1524_v10 = vld [vmem:[%s2502_s25 + $0x4] sm:$0xf]  ;;  %v1537_v12 = vld [vmem:[%s2502_s25 + $0x8] sm:$0xf]  ;;  %s2312_s17 = scvt.s32.f32 %s640_s22 }
  0x7a   : > { %1731 = vmatprep.subr.msk.bf16.mxu0 %vm737_vm2, %v768_v8  ;;  %v886_v9 = vsel %vm737_vm2, %v768_v8, 0  ;;  %1730 = vmatprep.subr.msk.bf16.mxu1 %vm737_vm2, %v1524_v10  ;;  %v806_v11 = vsel %vm737_vm2, %v1524_v10, 0  ;;  %v1543_v13 = vld [vmem:[%s2502_s25 + $0xc] sm:$0xf]  ;;  %v2302_v14 = vsel %vm737_vm2, %v1537_v12, 0 }
  0x7b   : > { %1675 = vmatmul.mubr.msk.bf16.vlgmr.msra.gmra.mxu1 %vm499_vm1, %v1862_v4  ;;  %v2306_v15 = vsel %vm737_vm2, %v1543_v13, 0  ;;  %v1501_v16 = vld [vmem:[%s2503_s3] ss:$0 sm:$0xff]  ;;  %v642_v23 = vstv %s2312_s17 }
  0x7c   : > { %1663 = vmatmul.mubr.msk.bf16.vlgmr.msra.gmra.mxu0 %vm499_vm1, %v1863_v5  ;;  %1679 = vmatpush3.bf16.msra.mxu1 %v806_v11 }
  0x7d   : > { %1666 = vmatprep.mubr.msk.bf16.mxu0 %vm499_vm1, %v1864_v6  ;;  %1689 = vmatpush3.bf16.msra.mxu0 %v886_v9  ;;  %v1866_v9 = vld [vmem:[#allocation7 + $0x8] sm:$0xff]  }
  0x7e   : > { %1732 = vmatprep.subr.msk.bf16.mxu1 %vm737_vm2, %v1537_v12  ;;  %1733 = vmatprep.subr.msk.bf16.mxu0 %vm737_vm2, %v1543_v13 }
  0x84   : > { %1667 = vmatmul.mubr.msk.bf16.gmra.mxu0 %vm499_vm1, %v1865_v7 }
 0x13b   : > { %v629_v17 = vpop.f32.mrf.mxu1 }
 0x13c   : > { %v630_v18 = vadd.f32 %v1501_v16, %v629_v17  ;;  %v1664_v19 = vpop.f32.mrf.mxu0 }
 0x13d   : > { %v555_v20 = vadd.f32 %v1664_v19, %v1501_v16  ;;  %v1676_v21 = vpop.f32.mrf.mxu1 }
 0x13e   : > { %v636_v22 = vmax.f32 %v630_v18, 0.0  ;;  %v546_v24 = vpop.f32.mrf.mxu0 }
 0x13f   : > { %v579_v25 = vmax.f32 %v555_v20, 0.0  ;;  %v547_v26 = vadd.f32 %v1501_v16, %v546_v24  ;;  %v632_v27 = vpop.f32.mrf.mxu1 }
 0x140   : > { %v1665_v28 = vpop.f32.mrf.mxu0  ;;  %v2315_v29 = vmul.f32 %v642_v23, %v636_v22  ;;  %v633_v31 = vadd.f32 %v1501_v16, %v632_v27 }
 0x141   : > { %v577_v30 = vmax.f32 %v547_v26, 0.0  ;;  %v558_v32 = vadd.f32 %v1665_v28, %v1501_v16  ;;  %v1677_v33 = vpop.f32.mrf.mxu1  ;;  %v1582_v34 = vpack.c.bf16 %v579_v25, %v579_v25 }
 0x142   : > { %v549_v35 = vpop.f32.mrf.mxu0  ;;  %v1588_v39 = vpack.c.bf16 %v2315_v29, %v2315_v29  ;;  %v637_v40 = vmax.f32 %v633_v31, 0.0 }
 0x143   : > { %v1580_v36 = vpack.c.bf16 %v577_v30, %v577_v30  ;;  %v580_v37 = vmax.f32 %v558_v32, 0.0  ;;  %v690_v41 = vshll.u32 %v1582_v34, 16  ;;  %v550_v43 = vadd.f32 %v1501_v16, %v549_v35 }
 0x144   : > { %v1668_v38 = vpop.f32.mrf.mxu0  ;;  %v688_v46 = vshrl.u32 %v1582_v34, 16  ;;  %v751_v48 = vshrl.u32 %v1588_v39, 16  ;;  %v753_v49 = vshll.u32 %v1588_v39, 16  ;;  %v2319_v50 = vmul.f32 %v642_v23, %v637_v40 }
 0x145   : > { %v1583_v42 = vpack.c.bf16 %v580_v37, %v580_v37  ;;  %v676_v45 = vshll.u32 %v1580_v36, 16  ;;  %v692_v52 = vrot.slane %v690_v41, 1  ;;  %v674_v53 = vshrl.u32 %v1580_v36, 16 }
 0x146   : > { %v562_v44 = vpop.f32.mrf.mxu0  ;;  %v2321_v54 = vpack.c.bf16 %v580_v37, %v579_v25  ;;  %v578_v55 = vmax.f32 %v550_v43, 0.0  ;;  %v571_v58 = vadd.f32 %v1668_v38, %v1501_v16  ;;  %v755_v1 = vrot.slane %v753_v49, 1 }
 0x147   : > { %v697_v51 = vshll.u32 %v1583_v42, 16  ;;  %v678_v57 = vrot.slane %v676_v45, 1  ;;  %v563_v59 = vadd.f32 %v1501_v16, %v562_v44  ;;  %v2327_v2 = vpack.c.bf16 %v2319_v50, %v2319_v50 }
 0x148   : > { %v1669_v47 = vpop.f32.mrf.mxu0  ;;  %v2323_v62 = vpack.c.bf16 %v578_v55, %v577_v30  ;;  %v1581_v63 = vpack.c.bf16 %v578_v55, %v578_v55  ;;  %v583_v3 = vmax.f32 %v571_v58, 0.0  ;;  %v693_v5 = vor.u32 %v692_v52, %v688_v46 }
 0x149   : > { %v574_v60 = vadd.f32 %v1669_v47, %v1501_v16  ;;  %v699_v61 = vrot.slane %v697_v51, 1  ;;  %v581_v4 = vmax.f32 %v563_v59, 0.0  ;;  %v695_v6 = vshrl.u32 %v1583_v42, 16 }
 0x14a   : > { %v565_v56 = vpop.f32.mrf.mxu0  ;;  %v683_v7 = vshll.u32 %v1581_v63, 16  ;;  %1690 = vmatprep.mubr.msk.bf16.mxu0 %vm791_vm4, %v2323_v62  ;;  %v679_v10 = vor.u32 %v678_v57, %v674_v53  ;;  %v1586_v11 = vpack.c.bf16 %v583_v3, %v583_v3  ;;  %v681_v17 = vshrl.u32 %v1581_v63, 16 }
 0x14b   : > { %v566_v0 = vadd.f32 %v1501_v16, %v565_v56  ;;  %v2329_v8 = vmax.f32 %v574_v60, 0.0  ;;  %v1584_v12 = vpack.c.bf16 %v581_v4, %v581_v4  ;;  %1691 = vmatmul.mubr.msk.bf16.vlgmr.msra.gmra.mxu0 %vm791_vm4, %v2321_v54  ;;  %v700_v16 = vor.u32 %v699_v61, %v695_v6 }
 0x14c   : > { %v685_v18 = vrot.slane %v683_v7, 1  ;;  %1709 = vmatpush3.bf16.msra.mxu0 %v2306_v15  ;;  %v756_v19 = vor.u32 %v755_v1, %v751_v48  ;;  %v718_v20 = vshll.u32 %v1586_v11, 16  ;;  %v742_v22 = vsel %vm2335_vm5, %v693_v5, 0 }
 0x14d   : > { %v582_v13 = vmax.f32 %v566_v0, 0.0  ;;  %v704_v21 = vshll.u32 %v1584_v12, 16  ;;  %v760_v23 = vshll.u32 %v2327_v2, 16  ;;  %v1587_v25 = vpack.c.bf16 %v2329_v8, %v2329_v8 }
 0x14e   : > { %v686_v24 = vor.u32 %v685_v18, %v681_v17  ;;  %v720_v26 = vrot.slane %v718_v20, 1  ;;  %v740_v30 = vsel %vm2335_vm5, %v679_v10, 0  ;;  %v743_v15 = vsel %vm2335_vm5, %v700_v16, 0 }
 0x14f   : > { %v647_v27 = vpack.c.bf16 %v582_v13, %v581_v4  ;;  %v1585_v28 = vpack.c.bf16 %v582_v13, %v582_v13  ;;  %v706_v31 = vrot.slane %v704_v21, 1  ;;  %v725_v32 = vshll.u32 %v1587_v25, 16 }
 0x150   : > { %v741_v33 = vsel %vm2335_vm5, %v686_v24, 0  ;;  %v716_v34 = vshrl.u32 %v1586_v11, 16  ;;  %v702_v35 = vshrl.u32 %v1584_v12, 16  ;;  %v648_v36 = vpack.c.bf16 %v2329_v8, %v583_v3 }
 0x151   : > { %v723_v37 = vshrl.u32 %v1587_v25, 16  ;;  %1694 = vmatprep.mubr.msk.bf16.mxu0 %vm791_vm4, %v647_v27  ;;  %v727_v38 = vrot.slane %v725_v32, 1  ;;  %v711_v39 = vshll.u32 %v1585_v28, 16  ;;  %v1525_v40 = vcombine.low %v740_v30, %v741_v33 }
 0x152   : > { %v1544_v41 = vcombine.low %v741_v33, %v742_v22  ;;  %v1526_v42 = vcombine.low %v742_v22, %v743_v15  ;;  %v721_v43 = vor.u32 %v720_v26, %v716_v34  ;;  %v707_v44 = vor.u32 %v706_v31, %v702_v35 }
 0x153   : > { %1695 = vmatmul.mubr.msk.bf16.gmra.mxu0 %vm791_vm4, %v648_v36  ;;  %v728_v45 = vor.u32 %v727_v38, %v723_v37  ;;  %v709_v46 = vshrl.u32 %v1585_v28, 16  ;;  %v713_v47 = vrot.slane %v711_v39, 1  ;;  %1680 = vmatprep.mubr.msk.bf16.mxu1 %vm791_vm4, %v1525_v40  ;;  %v758_v48 = vshrl.u32 %v2327_v2, 16 }
 0x154   : > { %1710 = vmatprep.mubr.msk.bf16.mxu0 %vm791_vm4, %v1544_v41  ;;  %1681 = vmatmul.mubr.msk.bf16.vlgmr.msra.gmra.mxu1 %vm791_vm4, %v1526_v42  ;;  %v762_v49 = vrot.slane %v760_v23, 1  ;;  %v766_v51 = vsel %vm2335_vm5, %v756_v19, 0  ;;  %v654_v53 = vunpack.c.h.b16 %v2323_v62  ;;  %v744_v55 = vsel %vm2335_vm5, %v707_v44, 0 }
 0x155   : > { %v714_v52 = vor.u32 %v713_v47, %v709_v46  ;;  %1699 = vmatpush3.bf16.msra.mxu1 %v2302_v14  ;;  %v746_v57 = vsel %vm2335_vm5, %v721_v43, 0  ;;  %v747_v58 = vsel %vm2335_vm5, %v728_v45, 0  ;;  %v1545_v59 = vcombine.low %v743_v15, %v766_v51  ;;  %v1552_v46 = vld [vmem:[%s2506_s7] ss:$0 sm:$0xff] }
 0x156   : > { %v655_v63 = vunpack.c.l.b16 %v2321_v54  ;;  %v763_v14 = vor.u32 %v762_v49, %v758_v48  ;;  %v661_v62 = vpack.c.bf16 %v2319_v50, %v2315_v29  ;;  %v1528_v0 = vcombine.low %v746_v57, %v747_v58  ;;  %1718 = vmatprep.subr.bf16.mxu1 %v1866_v9 }
 0x157   : > { %v745_v56 = vsel %vm2335_vm5, %v714_v52, 0  ;;  %v656_v4 = vunpack.c.h.b16 %v2321_v54  ;;  %v658_v5 = vunpack.c.h.b16 %v647_v27  ;;  %v659_v6 = vunpack.c.l.b16 %v648_v36  ;;  %v1867_v54 = vld [vmem:[#allocation7] sm:$0xff]  }
 0x158   : > { %v1527_v60 = vcombine.low %v744_v55, %v745_v56  ;;  %v1546_v61 = vcombine.low %v745_v56, %v746_v57  ;;  %v955_v1 = vpack.c.b16 %v655_v63, %v654_v53  ;;  %v767_v2 = vsel %vm2335_vm5, %v763_v14, 0 }
 0x159   : > { %v663_v3 = vunpack.c.l.b16 %v661_v62  ;;  %v1547_v29 = vcombine.low %v747_v58, %v767_v2  ;;  %v957_v10 = vpack.c.b16 %v659_v6, %v658_v5  ;;  %v1590_v11 = vpack.c.bf16 %v2319_v50, %v2329_v8 }
 0x15a   : > { %1684 = vmatprep.mubr.msk.bf16.mxu1 %vm791_vm4, %v1527_v60 }
 0x15b   : > { %1711 = vmatmul.mubr.msk.bf16.vlgmr.msra.gmra.mxu0 %vm791_vm4, %v1545_v59  ;;  %v956_v7 = vpack.c.b16 %v663_v3, %v656_v4 }
 0x15c   : > { %1714 = vmatprep.mubr.msk.bf16.mxu0 %vm791_vm4, %v1546_v61  ;;  %1685 = vmatmul.mubr.msk.bf16.gmra.mxu1 %vm791_vm4, %v1528_v0 }
 0x15d   : > { %1700 = vmatprep.mubr.msk.bf16.mxu1 %vm791_vm4, %v955_v1 }
 0x163   : > { %1715 = vmatmul.mubr.msk.bf16.gmra.mxu0 %vm791_vm4, %v1547_v29 }
 0x164   : > { %1701 = vmatmul.mubr.msk.bf16.vlgmr.msra.gmra.mxu1 %vm791_vm4, %v956_v7 }
 0x165   : > { %1704 = vmatprep.mubr.msk.bf16.mxu1 %vm791_vm4, %v957_v10  ;;  %1719 = vmatpush3.bf16.msra.mxu1 %v1866_v9 }
 0x166   : > { %1720 = vmatprep.subr.bf16.mxu1 %v1867_v54 }
 0x169   : > { %1721 = vmatpush3.bf16.msra.mxu1 %v1867_v54 }
 0x16c   : > { %1705 = vmatmul.mubr.msk.bf16.gmra.mxu1 %vm791_vm4, %v1590_v11 }
 0x20b   : > { %v1692_v12 = vpop.f32.mrf.mxu0 }
 0x20d   : > { %v922_v13 = vpop.f32.mrf.mxu0 }
 0x20f   : > { %v1693_v16 = vpop.f32.mrf.mxu0 }
 0x211   : > { %v925_v17 = vpop.f32.mrf.mxu0 }
 0x213   : > { %v1696_v18 = vpop.f32.mrf.mxu0 }
 0x214   : > { %v1682_v19 = vpop.f32.mrf.mxu1 }
 0x215   : > { %v938_v20 = vpop.f32.mrf.mxu0  ;;  %v931_v31 = vadd.f32 %v1692_v12, %v1682_v19 }
 0x216   : > { %v842_v21 = vpop.f32.mrf.mxu1 }
 0x217   : > { %v1697_v22 = vpop.f32.mrf.mxu0  ;;  %v923_v34 = vadd.f32 %v922_v13, %v842_v21 }
 0x218   : > { %v1683_v23 = vpop.f32.mrf.mxu1 }
 0x219   : > { %v941_v24 = vpop.f32.mrf.mxu0  ;;  %v934_v37 = vadd.f32 %v1693_v16, %v1683_v23 }
 0x21a   : > { %v845_v50 = vpop.f32.mrf.mxu1 }
 0x21b   : > { %v1712_v8 = vpop.f32.mrf.mxu0  ;;  %v926_v41 = vadd.f32 %v925_v17, %v845_v50 }
 0x21c   : > { %v1686_v25 = vpop.f32.mrf.mxu1 }
 0x21d   : > { %v1106_v26 = vpop.f32.mrf.mxu0  ;;  %v947_v49 = vadd.f32 %v1696_v18, %v1686_v25 }
 0x21e   : > { %v858_v27 = vpop.f32.mrf.mxu1 }
 0x21f   : > { %v1713_v28 = vpop.f32.mrf.mxu0  ;;  %v939_v53 = vadd.f32 %v938_v20, %v858_v27 }
 0x220   : > { %v1687_v30 = vpop.f32.mrf.mxu1 }
 0x221   : > { %v1109_v32 = vpop.f32.mrf.mxu0  ;;  %v950_v14 = vadd.f32 %v1697_v22, %v1687_v30 }
 0x222   : > { %v861_v15 = vpop.f32.mrf.mxu1 }
 0x223   : > { %v1716_v39 = vpop.f32.mrf.mxu0  ;;  %v942_v2 = vadd.f32 %v941_v24, %v861_v15 }
 0x224   : > { %v1702_v33 = vpop.f32.mrf.mxu1 }
 0x225   : > { %v1041_v35 = vadd.f32 %v1702_v33, %v931_v31  ;;  %v1122_v51 = vpop.f32.mrf.mxu0 }
 0x226   : > { %v1008_v36 = vpop.f32.mrf.mxu1 }
 0x227   : > { %v1039_v38 = vadd.f32 %v1008_v36, %v923_v34  ;;  %v1139_v44 = vadd.f32 %v1712_v8, %v1041_v35  ;;  %v1717_v62 = vpop.f32.mrf.mxu0 }
 0x228   : > { %v1703_v40 = vpop.f32.mrf.mxu1 }
 0x229   : > { %v1137_v42 = vadd.f32 %v1106_v26, %v1039_v38  ;;  %v1042_v43 = vadd.f32 %v1703_v40, %v934_v37  ;;  %v1154_v58 = vadd.f32 %v1552_v46, %v1139_v44  ;;  %v1125_v12 = vpop.f32.mrf.mxu0  ;;  %v1553_v26 = vld [vmem:[%s2507_s26] ss:$0 sm:$0xff] }
 0x22a   : > { %v1011_v45 = vpop.f32.mrf.mxu1 }
 0x22b   : > { %v1140_v47 = vadd.f32 %v1713_v28, %v1042_v43  ;;  %v1040_v48 = vadd.f32 %v1011_v45, %v926_v41  ;;  %v1152_v55 = vadd.f32 %v1552_v46, %v1137_v42  ;;  %v1162_v29 = vmax.f32 %v1154_v58, 0.0 }
 0x22c   : > { %v1706_v52 = vpop.f32.mrf.mxu1 }
 0x22d   : > { %v1155_v56 = vadd.f32 %v1552_v46, %v1140_v47  ;;  %v1138_v57 = vadd.f32 %v1109_v32, %v1040_v48  ;;  %v1045_v59 = vadd.f32 %v1706_v52, %v947_v49  ;;  %v1160_v3 = vmax.f32 %v1152_v55, 0.0 }
 0x22e   : > { %v1024_v60 = vpop.f32.mrf.mxu1 }
 0x22f   : > { %v1153_v61 = vadd.f32 %v1552_v46, %v1138_v57  ;;  %v1043_v63 = vadd.f32 %v1024_v60, %v939_v53  ;;  %v1163_v0 = vmax.f32 %v1155_v56, 0.0  ;;  %v1143_v6 = vadd.f32 %v1716_v39, %v1045_v59 }
 0x230   : > { %v1707_v1 = vpop.f32.mrf.mxu1 }
 0x231   : > { %v1161_v4 = vmax.f32 %v1153_v61, 0.0  ;;  %v1141_v5 = vadd.f32 %v1122_v51, %v1043_v63  ;;  %v1046_v7 = vadd.f32 %v1707_v1, %v950_v14  ;;  %v1169_v54 = vpack.c.bf16 %v1163_v0, %v1162_v29 }
 0x232   : > { %v1027_v10 = vpop.f32.mrf.mxu1  ;;  %v1158_v18 = vadd.f32 %v1552_v46, %v1143_v6 }
 0x233   : > { %v1168_v11 = vpack.c.bf16 %v1161_v4, %v1160_v3  ;;  %v1044_v9 = vadd.f32 %v1027_v10, %v942_v2  ;;  %v1144_v13 = vadd.f32 %v1717_v62, %v1046_v7  ;;  %v1156_v16 = vadd.f32 %v1552_v46, %v1141_v5 }
 0x234   : > { %v1166_v24 = vmax.f32 %v1158_v18, 0.0 }
 0x235   : > { %v1142_v17 = vadd.f32 %v1125_v12, %v1044_v9  ;;  %1722 = vmatprep.mubr.msk.bf16.mxu1 %vm499_vm1, %v1168_v11  ;;  %v1159_v19 = vadd.f32 %v1552_v46, %v1144_v13  ;;  %v1164_v22 = vmax.f32 %v1156_v16, 0.0 }
 0x236   : > { %1723 = vmatmul.mubr.msk.bf16.vlgmr.msra.gmra.mxu1 %vm499_vm1, %v1169_v54 }
 0x237   : > { %v1157_v20 = vadd.f32 %v1552_v46, %v1142_v17  ;;  %v1167_v21 = vmax.f32 %v1159_v19, 0.0 }
 0x239   : > { %v1165_v23 = vmax.f32 %v1157_v20, 0.0  ;;  %v1171_v8 = vpack.c.bf16 %v1167_v21, %v1166_v24 }
 0x23b   : > { %v1170_v50 = vpack.c.bf16 %v1165_v23, %v1164_v22 }
 0x23d   : > { %1726 = vmatprep.mubr.msk.bf16.mxu1 %vm499_vm1, %v1170_v50 }
 0x23e   : > { %1727 = vmatmul.mubr.msk.bf16.gmra.mxu1 %vm499_vm1, %v1171_v8 }
 0x2f6   : > { %v1724_v25 = vpop.f32.mrf.mxu1 }
 0x2f7   : > { %v1250_v28 = vadd.f32 %v1724_v25, %v1553_v26 }
 0x2f8   : > { %v1241_v27 = vpop.f32.mrf.mxu1 }
 0x2f9   : > { %v1242_v15 = vadd.f32 %v1553_v26, %v1241_v27  ;;  %v1274_v33 = vmax.f32 %v1250_v28, 0.0 }
 0x2fa   : > { %v1725_v30 = vpop.f32.mrf.mxu1 }
 0x2fb   : > { %v1253_v31 = vadd.f32 %v1725_v30, %v1553_v26  ;;  %v1272_v37 = vmax.f32 %v1242_v15, 0.0 }
 0x2fc   : > { %v1244_v32 = vpop.f32.mrf.mxu1 }
 0x2fd   : > { %v1275_v34 = vmax.f32 %v1253_v31, 0.0  ;;  %v1245_v35 = vadd.f32 %v1553_v26, %v1244_v32 }
 0x2fe   : > { %v1728_v36 = vpop.f32.mrf.mxu1 }
 0x2ff   : > { %v1608_v38 = vpack.c.bf16 %v1275_v34, %v1274_v33  ;;  %v1273_v39 = vmax.f32 %v1245_v35, 0.0  ;;  %v1266_v42 = vadd.f32 %v1728_v36, %v1553_v26 }
 0x300   : > { %v1257_v40 = vpop.f32.mrf.mxu1 }
 0x301   : > { %1620 = vst [vmem:[%s437_s20 + $0x8] sm:$0xff] %v1608_v38   ;;  %v1603_v41 = vpack.c.bf16 %v1273_v39, %v1272_v37  ;;  %v1258_v44 = vadd.f32 %v1553_v26, %v1257_v40  ;;  %v1278_v47 = vmax.f32 %v1266_v42, 0.0 }
 0x302   : > { %v1729_v43 = vpop.f32.mrf.mxu1 }
 0x303   : > { %1604 = vst [vmem:[%s437_s20] sm:$0xff] %v1603_v41   ;;  %v1269_v45 = vadd.f32 %v1729_v43, %v1553_v26  ;;  %v1276_v51 = vmax.f32 %v1258_v44, 0.0 }
 0x304   : > { %v1260_v46 = vpop.f32.mrf.mxu1 }
 0x305   : > { %v1279_v48 = vmax.f32 %v1269_v45, 0.0  ;;  %v1261_v49 = vadd.f32 %v1553_v26, %v1260_v46 }
 0x307   : > { %v1618_v52 = vpack.c.bf16 %v1279_v48, %v1278_v47  ;;  %v1277_v53 = vmax.f32 %v1261_v49, 0.0 }
 0x309   : > { %1622 = vst [vmem:[%s437_s20 + $0x18] sm:$0xff] %v1618_v52   ;;  %v1613_v55 = vpack.c.bf16 %v1277_v53, %v1276_v51 }
 0x30b   : > { %1621 = vst [vmem:[%s437_s20 + $0x10] sm:$0xff] %v1613_v55  }
 0x30c   : > { %s2508_s23 = sld [smem:[#allocation23_spill]]  ;;  %s1599_s12 = sshll.u32 %s1998_s11, 8 }
 0x30d   : > { %s1347_s10 = sshll.u32 %s437_s20, 4  ;;  %s2509_s18 = sld [smem:[#allocation32_spill]]  ;;  %s1348_s10 = int_to_ptr.vmem [resolvable:$true] %s1347_s10 }
 0x30e   : > { %s2022_s0 = smov 256   ;;  %s2023_s5 = smov 512  }
 0x30f   : > { %s2024_s8 = smov 4   ;;  %s2025_s22 = smov 64  }
 0x310   : > { %s2026_s11 = smov 131072   ;;  %s2027_s15 = smov 0  }
 0x312   : > { %p2510_p2 = scmp.ne.s32.totalorder %s2508_s23, 0 }
 0x313   : > { %s1336_s27 = scalar_lea.hbm %s2509_s18, %s1599_s12 }
 0x314   : > { %1749 = sst [smem:[#allocation12]] (%p2510_p2), %s2022_s0 }
 0x315   : > { %1750 = sst [smem:[#allocation12 + $0x1]] (%p2510_p2), %s2023_s5 }
 0x316   : > { %1751 = sst [smem:[#allocation12 + $0x2]] (%p2510_p2), %s2024_s8 }
 0x317   : > { %1752 = sst [smem:[#allocation12 + $0x3]] (%p2510_p2), %s2025_s22 }
 0x318   : > { %1753 = sst [smem:[#allocation12 + $0x4]] (%p2510_p2), %s2025_s22 }
 0x319   : > { %1754 = sst [smem:[#allocation12 + $0x5]] (%p2510_p2), %s2024_s8 }
 0x31a   : > { %1755 = dma.general (%p2510_p2), %s1348_s10, 512, %s1336_s27, %s1321_s14, %s2026_s11, [#allocation12], %s2027_s15, 0  }
 0x31b PF: > { %s2511_s30 = sld [smem:[#allocation18_spill]] }
 0x31c   : > { %s2512_s3 = sld [smem:[#allocation25_spill]] }
 0x321   : > { %s1375_s17 = sand.u32 1, %s2511_s30  }
 0x322   : > { %p2513_p3 = scmp.ne.s32.totalorder %s2512_s3, 0  ;;  %s1376_s19 = scalar_lea.sflag [#allocation4], %s1375_s17 }
 0x324   : > { %p1762_p0 = pnand %p1487_p7, %p2513_p3 }
 0x326   : > { %p1763_p6 = pneg %p1762_p0 }
 0x328   : > { %1969 = dma.done.wait (%p1763_p6), %s1376_s19, 512  }
 0x329   : > { %1971 = vsyncadd (%p1763_p6), %s1376_s19, 4294966784  ;;  %s27_s13 = sadd.s32 1, %s2006_s13   ;;  %s2514_s6 = sld [smem:[#allocation24_spill]] }
 0x32a   : > { %p24_p4 = scmp.ge.s32.totalorder %s27_s13, 4   ;;  %s2515_s7 = sld [smem:[#allocation19_spill]] }
 0x32b   : > { %s2516_s10 = sld [smem:[#allocation22_spill]]  ;;  %s2519_s27 = smov %s1978_s28 }
 0x32c   : > { %s2517_s11 = sld [smem:[#allocation20_spill]]  ;;  %s2520_s28 = smov %s1982_s29 }
 0x32d   : > { %s2518_s12 = sld [smem:[#allocation21_spill]]  ;;  %s2522_s30 = smov %s1990_s9 }
 0x32e   :  { %26 = sbr.rel (!%p24_p4) target bundleno = 18 (0x12), region = 127 }
 0x32f   : > { %s2521_s29 = smov %s2514_s6 }
 0x330   : > { %s2523_s9 = smov %s2515_s7 }
 0x333   :  { %1381 = vsyncpa [#allocation3], 1 }
 0x334   :  { %1383 = vsyncpa [#allocation3 + $0x1], 1 }
 0x335   :  { %1384 = vsyncpa [#allocation6], 1 }
 0x336   :  { %1386 = vsyncpa [#allocation6 + $0x1], 1 }
 0x337   :  { %1387 = vsyncpa [#allocation4], 1 }
 0x338   :  { %1389 = vsyncpa [#allocation4 + $0x1], 1 }

</bundles_post_ra>
